<compile_context>
chip_gen: v7x
topology: tpu7x:2x2x1
jax: 0.10.0
libtpu: 0.0.40
codegen_flags: <defaults>
</compile_context>

<pallas_src>
import math
import jax
import jax.numpy as jnp
from jax.experimental import pallas as pl
from jax.experimental.pallas import tpu as pltpu

_LANE = 128
_SUBLANE = 8
_RESIDENT_W_MAX_BYTES = 16 * 1024 * 1024   # above this, fall back to K-tiling
_FALLBACK_TK = 2048
_TM_CANDIDATES = (4096, 2048, 1024, 512, 256, 128, 64, 32, 16, 8)


def _round_up(x, m):
    return ((x + m - 1) // m) * m


def _vmem_budget():
    """Generation-aware VMEM sizing (v5e/v6e: 128 MiB, v7x: 64 MiB)."""
    try:
        cap = int(pltpu.get_tpu_info().vmem_capacity_bytes)
    except Exception:
        cap = 64 * 1024 * 1024          # conservative fallback (v7x size)
    budget = int(cap * 0.70)            # per-step working-set budget
    limit = int(cap * 0.85)             # scoped VMEM limit handed to Mosaic
    return budget, limit


def _pick_tm(M, bytes_per_row, fixed_bytes, budget):
    """Largest M tile that fits the budget; prefers a TM that divides M exactly
    (no HBM padding copy of data) and leaves >= 2 M tiles so the "parallel"
    axis can actually shard across both TensorCores on v7x."""
    avail = max(budget - fixed_bytes, bytes_per_row * _SUBLANE)
    cap_rows = max(_SUBLANE, avail // bytes_per_row)
    # Preferred: exact divisor of M, multiple of 8, at least 2 tiles.
    for c in _TM_CANDIDATES:
        if c <= cap_rows and M % c == 0 and M // c >= 2:
            return c, M
    # Whole-M single block (block dims equal to full dims are always legal).
    if M <= cap_rows:
        return M, M
    # Rare fallback: pad M up to a multiple of the largest fitting candidate.
    for c in _TM_CANDIDATES:
        if c <= cap_rows:
            return c, _round_up(M, c)
    return _SUBLANE, _round_up(M, _SUBLANE)


def _predictor_kernel_fast(data_ref, w_ref, mask_ref, out_ref):
    # data_ref: [TM, D]  w_ref: [D, T_pad] (resident)  mask_ref: [TM, 1]
    # out_ref:  [TM, T_pad]
    out_ref[...] = (jnp.dot(data_ref[...], w_ref[...],
                            preferred_element_type=jnp.float32)
                    * mask_ref[...]).astype(out_ref.dtype)


def _predictor_kernel_acc(data_ref, w_ref, mask_ref, out_ref, acc_ref):
    # K-tiled path (only for very large D): f32 accumulator across the K axis.
    k = pl.program_id(1)

    @pl.when(k == 0)
    def _():
        acc_ref[...] = jnp.zeros_like(acc_ref)

    acc_ref[...] += jnp.dot(data_ref[...], w_ref[...],
                            preferred_element_type=jnp.float32)

    @pl.when(k == pl.num_programs(1) - 1)
    def _():
        out_ref[...] = (acc_ref[...] * mask_ref[...]).astype(out_ref.dtype)


def predictor_forward(data, weight, non_pad_mask, *, compute_dtype=None):
    """Pallas implementation of Predictor.forward: (data @ W.T) * non_pad_mask.

    data: [B, L, D], weight: [T, D] (PyTorch Linear layout),
    non_pad_mask: [B, L, 1].  Returns [B, L, T] float32.
    """
    B, L, D = data.shape
    T = weight.shape[0]
    M = B * L
    in_dtype = jnp.dtype(compute_dtype) if compute_dtype is not None else data.dtype
    itemsize = jnp.dtype(in_dtype).itemsize

    T_pad = _round_up(max(T, 1), _LANE)          # lane-dense output / MXU width
    budget, vmem_limit = _vmem_budget()

    data2d = data.reshape(M, D).astype(in_dtype)
    mask2d = non_pad_mask.reshape(M, 1).astype(jnp.float32)

    single_k = D * T_pad * itemsize <= _RESIDENT_W_MAX_BYTES

    if single_k:
        # ---- fast path: weight fully resident, no accumulator, 1-D M grid ----
        bytes_per_row = (2 * D * itemsize          # data, double-buffered
                         + 2 * _LANE * 4           # mask (lane-padded), double-buffered
                         + 2 * T_pad * 4)          # f32 output, double-buffered
        fixed = D * T_pad * itemsize               # resident weight (constant index_map)
        TM, M_pad = _pick_tm(M, bytes_per_row, fixed, budget)

        if M_pad != M:                             # rare: only when M is odd-shaped AND huge
            data2d = jnp.zeros((M_pad, D), data2d.dtype).at[:M].set(data2d)
            mask2d = jnp.zeros((M_pad, 1), jnp.float32).at[:M].set(mask2d)

        # PyTorch Linear stores [T, D]; build padded, pre-transposed [D, T_pad].
        w_dt = jnp.zeros((D, T_pad), in_dtype).at[:, :T].set(weight.T.astype(in_dtype))

        grid = (M_pad // TM,)
        cost = pl.CostEstimate(
            flops=2 * M_pad * D * T_pad,
            transcendentals=0,
            bytes_accessed=(M_pad * D * itemsize + D * T_pad * itemsize
                            + M_pad * T_pad * 4 + M_pad * 4),
        )
        out2d = pl.pallas_call(
            _predictor_kernel_fast,
            out_shape=jax.ShapeDtypeStruct((M_pad, T_pad), jnp.float32),
            grid_spec=pltpu.PrefetchScalarGridSpec(
                num_scalar_prefetch=0,
                grid=grid,
                in_specs=[
                    pl.BlockSpec((TM, D), lambda i: (i, 0)),       # data tile (streamed)
                    pl.BlockSpec((D, T_pad), lambda i: (0, 0)),    # weight (resident)
                    pl.BlockSpec((TM, 1), lambda i: (i, 0)),       # mask tile
                ],
                out_specs=pl.BlockSpec((TM, T_pad), lambda i: (i, 0)),
            ),
            compiler_params=pltpu.CompilerParams(
                dimension_semantics=("parallel",),
                vmem_limit_bytes=vmem_limit,
            ),
            cost_estimate=cost,
        )(data2d, w_dt, mask2d)
    else:
        # ---- K-tiled accumulation path (very large D only) ----
        TK = _FALLBACK_TK
        D_pad = _round_up(D, TK)
        bytes_per_row = (2 * TK * itemsize + 2 * _LANE * 4 + 2 * T_pad * 4
                         + T_pad * 4)              # + f32 accumulator row
        fixed = 2 * TK * T_pad * itemsize          # weight tile, double-buffered
        TM, M_pad = _pick_tm(M, bytes_per_row, fixed, budget)

        if (M_pad, D_pad) != (M, D):
            data2d = jnp.zeros((M_pad, D_pad), data2d.dtype).at[:M, :D].set(data2d)
        if M_pad != M:
            mask2d = jnp.zeros((M_pad, 1), jnp.float32).at[:M].set(mask2d)
        w_dt = jnp.zeros((D_pad, T_pad), in_dtype).at[:D, :T].set(weight.T.astype(in_dtype))

        grid = (M_pad // TM, D_pad // TK)
        cost = pl.CostEstimate(
            flops=2 * M_pad * D_pad * T_pad,
            transcendentals=0,
            bytes_accessed=(M_pad * D_pad * itemsize
                            + (M_pad // TM) * D_pad * T_pad * itemsize  # weight re-streamed per M tile
                            + M_pad * T_pad * 4 + M_pad * 4),
        )
        out2d = pl.pallas_call(
            _predictor_kernel_acc,
            out_shape=jax.ShapeDtypeStruct((M_pad, T_pad), jnp.float32),
            grid_spec=pltpu.PrefetchScalarGridSpec(
                num_scalar_prefetch=0,
                grid=grid,
                in_specs=[
                    pl.BlockSpec((TM, TK), lambda i, k: (i, k)),
                    pl.BlockSpec((TK, T_pad), lambda i, k: (k, 0)),
                    pl.BlockSpec((TM, 1), lambda i, k: (i, 0)),
                ],
                out_specs=pl.BlockSpec((TM, T_pad), lambda i, k: (i, 0)),
                scratch_shapes=[pltpu.VMEM((TM, T_pad), jnp.float32)],
            ),
            compiler_params=pltpu.CompilerParams(
                dimension_semantics=("parallel", "arbitrary"),
                vmem_limit_bytes=vmem_limit,
            ),
            cost_estimate=cost,
        )(data2d, w_dt, mask2d)

    # Slice stays inside the jitted wrapper so XLA can fuse it with consumers.
    return out2d[:M, :T].reshape(B, L, T)


def init_predictor_weight(key, dim, num_types):
    # xavier_normal_: std = gain * sqrt(2 / (fan_in + fan_out)), gain = 1
    std = math.sqrt(2.0 / (dim + num_types))
    return std * jax.random.normal(key, (num_types, dim), dtype=jnp.float32)


if __name__ == "__main__":
    B, L, D, T = 2, 8, 32, 16

    key = jax.random.PRNGKey(0)
    k_w, k_x = jax.random.split(key, 2)

    weight = init_predictor_weight(k_w, D, T)                 # [T, D] (PyTorch layout)
    data = jax.random.normal(k_x, (B, L, D), dtype=jnp.float32)
    # non_pad_mask: 1.0 for real events, 0.0 for padding (tail of seq 1 padded)
    seq_lens = jnp.array([L, L - 2])
    pos = jnp.arange(L)[None, :]                              # [1, L]
    non_pad_mask = (pos < seq_lens[:, None]).astype(jnp.float32)[..., None]  # [B, L, 1]

    fwd = jax.jit(predictor_forward, static_argnames=("compute_dtype",))

    out = jax.block_until_ready(fwd(data, weight, non_pad_mask))

    # reference check (plain JAX)
    ref = (data @ weight.T) * non_pad_mask
    assert out.shape == (B, L, T)
    assert jnp.allclose(out, ref, atol=1e-5, rtol=1e-5)

    # bf16 data/weight variant (halves HBM traffic; f32 accumulation retained)
    out_bf16 = jax.block_until_ready(
        fwd(data, weight, non_pad_mask, compute_dtype=jnp.bfloat16))
    assert out_bf16.shape == (B, L, T)
    assert jnp.allclose(out_bf16, ref, atol=1e-1, rtol=1e-1)

    print("KERNEL_OK")
</pallas_src>

<mosaic_0001>
module attributes {stable_mosaic.version = 11 : i64} {
  func.func @_predictor_kernel_fast(%arg0: i32, %arg1: memref<8x32xf32, #tpu.memory_space<vmem>>, %arg2: memref<32x128xf32, #tpu.memory_space<vmem>>, %arg3: memref<8x1xf32, #tpu.memory_space<vmem>>, %arg4: memref<8x128xf32, #tpu.memory_space<vmem>>) attributes {dimension_semantics = [#tpu.dimension_semantics<parallel>], iteration_bounds = array<i64: 2>, scalar_prefetch = 0 : i64, scratch_operands = 0 : i64, tpu.core_type = #tpu.core_type<tc>, window_params = [{transform_indices = @transform_0, window_bounds = array<i64: 8, 32>}, {pipeline_mode = #tpu.pipeline_mode<synchronous>, transform_indices = @transform_1, window_bounds = array<i64: 32, 128>}, {transform_indices = @transform_2, window_bounds = array<i64: 8, 1>}, {transform_indices = @transform_3, window_bounds = array<i64: 8, 128>}]} {
    %c0 = arith.constant 0 : index
    %c0_0 = arith.constant 0 : index
    %0 = vector.load %arg1[%c0, %c0_0] : memref<8x32xf32, #tpu.memory_space<vmem>>, vector<8x32xf32>
    %c0_1 = arith.constant 0 : index
    %c0_2 = arith.constant 0 : index
    %1 = vector.load %arg2[%c0_1, %c0_2] : memref<32x128xf32, #tpu.memory_space<vmem>>, vector<32x128xf32>
    %cst = arith.constant dense<0.000000e+00> : vector<8x128xf32>
    %2 = tpu.matmul %0, %1, %cst {dimension_numbers = #tpu.dot_dimension_numbers<[1], [0], [0], [1], [0, 0, 1, 1], [], []>} : vector<8x32xf32>, vector<32x128xf32>, vector<8x128xf32> -> vector<8x128xf32>
    %c0_3 = arith.constant 0 : index
    %c0_4 = arith.constant 0 : index
    %3 = vector.load %arg3[%c0_3, %c0_4] : memref<8x1xf32, #tpu.memory_space<vmem>>, vector<8x1xf32>
    %4 = vector.broadcast %3 : vector<8x1xf32> to vector<8x128xf32>
    %5 = arith.mulf %2, %4 : vector<8x128xf32>
    %c0_5 = arith.constant 0 : index
    %c0_6 = arith.constant 0 : index
    %6 = vector.load %arg4[%c0_5, %c0_6] : memref<8x128xf32, #tpu.memory_space<vmem>>, vector<8x128xf32>
    tpu.vector_store %arg4[%c0_5, %c0_6], %5 {strides = array<i32>} : memref<8x128xf32, #tpu.memory_space<vmem>>, vector<8x128xf32>,
    return
  }
  func.func @transform_0(%arg0: i32) -> (i32, i32) {
    %c0_i32 = arith.constant 0 : i32
    %c0_i32_0 = arith.constant 0 : i32
    return %arg0, %c0_i32 : i32, i32
  }
  func.func @transform_1(%arg0: i32) -> (i32, i32) {
    %c0_i32 = arith.constant 0 : i32
    %c0_i32_0 = arith.constant 0 : i32
    %c0_i32_1 = arith.constant 0 : i32
    return %c0_i32, %c0_i32_0 : i32, i32
  }
  func.func @transform_2(%arg0: i32) -> (i32, i32) {
    %c0_i32 = arith.constant 0 : i32
    %c0_i32_0 = arith.constant 0 : i32
    return %arg0, %c0_i32 : i32, i32
  }
  func.func @transform_3(%arg0: i32) -> (i32, i32) {
    %c0_i32 = arith.constant 0 : i32
    %c0_i32_0 = arith.constant 0 : i32
    return %arg0, %c0_i32 : i32, i32
  }
}

</mosaic_0001>

<bundles_post_ra>
// kernel: predictor_forward.1
= control target key start
LH: loop header
LB: loop body
LE: loop exit
PB: predicated region body
PF: predicated region fallthrough
CT: control target
= control target key end

     0   :  { %s413_s12 = smov 0   ;;  %s445_s0 = inlined_call_operand.vmem [shape: f32[16,32], index: 0, kind: input, shape index: {}]   ;;  %s446_s1 = inlined_call_operand.vmem [shape: f32[32,128], index: 1, kind: input, shape index: {}]   ;;  %s447_s2 = inlined_call_operand.vmem [shape: f32[16,1], index: 2, kind: input, shape index: {}]   ;;  %s448_s3 = inlined_call_operand.vmem [shape: f32[16,128], index: 3, kind: output, shape index: {}]  }
   0x1 LB: > { %s335_s13 = sadd.s32 4294967295, %s387_s12   ;;  %p339_p0 = scmp.ge.s32.totalorder %s387_s12, 1  ;;  %s387_s12 = sphi %s413_s12, %s13_s12  }
   0x2   : > { %p145_p1 = scmp.lt.s32.totalorder %s387_s12, 3 }
   0x4   : > { %p146_p2 = pnand %p339_p0, %p145_p1 }
   0x5   : > { %v184_v0 = vld [vmem:[%s446_s1] sm:$0xff] (!%p146_p2)  ;;  %v185_v1 = vld [vmem:[%s446_s1 + $0x8] sm:$0xff] (!%p146_p2)  ;;  %v186_v2 = vld [vmem:[%s446_s1 + $0x10] sm:$0xff] (!%p146_p2)  ;;  %v389_v3 = vmov (!%p146_p2), 0.0|0.0   ;;  %vm390_vm0 = vmmov (!%p146_p2), 0   ;;  %v391_v6 = vmov (!%p146_p2), 0.0  }
   0x6   : > { %149 = sbr.rel (%p146_p2) target bundleno = 232 (0xe8), region = 32  ;;  %362 = vmatprep.subr.bf16.mxu0 (!%p146_p2), %v389_v3  ;;  %v363_v4 = vpack.c.bf16 (!%p146_p2), %v185_v1, %v184_v0  ;;  %v187_v5 = vld [vmem:[%s446_s1 + $0x18] sm:$0xff] (!%p146_p2)  ;;  %359 = vmatprep.mubr.msk.f32.mxu0 (!%p146_p2), %vm390_vm0, %v391_v6  ;;  %p171_p3 = scmp.lt.s32.totalorder (!%p146_p2), %s335_s13, 1  ;;  %v392_v7 = vmov (!%p146_p2), 0   ;;  %vm188_vm1 = vcmask (!%p146_p2), 261120  }
   0x7   : > { %380 = vset.pattern.permute.xlu0 (!%p146_p2), %v392_v7  ;;  %v366_v8 = vpack.c.bf16 (!%p146_p2), %v187_v5, %v186_v2 }
   0x8   : > { %364 = vmatpush3.bf16.msra.mxu0 (!%p146_p2), %v363_v4 }
   0x9   : > { %365 = vmatprep.subr.bf16.mxu0 (!%p146_p2), %v389_v3 }
   0xc   : > { %367 = vmatpush3.bf16.msra.mxu0 (!%p146_p2), %v366_v8 }
   0xd   : > { %s450_s13 = smov (!%p171_p3, %s335_s13), 1 }
   0xe   : > { %s340_s22 = sshll.u32 %s450_s13, 3 }
   0xf   : > { %s174_s25 = scalar_lea.vmem %s445_s0, %s340_s22  ;;  %s178_s28 = scalar_lea.vmem %s447_s2, %s340_s22 }
  0x10   : > { %v183_v9 = vld [vmem:[%s174_s25] sm:$0xff]  ;;  %s182_s4 = scalar_lea.vmem %s448_s3, %s340_s22 }
  0x11   : > { %v262_v10 = vld [vmem:[%s178_s28] sm:$0xff]  ;;  %360 = vmatmul.mubr.msk.f32.vlgmr.msra.gmra.mrb[0].mxu0 %vm188_vm1, %v183_v9 }
  0x12   : > { %265 = vperm.xlu0 %380, %v262_v10  }
  0x91   : > { %v266_v11 = vpop.permute.xlu0 %265 }
  0xe4   : > { %v258_v12 = vpop.f32.mrb[0].mxu0 }
  0xe5   : > { %v268_v13 = vmul.f32 %v266_v11, %v258_v12  ;;  %v361_v14 = vpop.f32.mrb[1].mxu0 }
  0xe7   : > { %269 = vst [vmem:[%s182_s4] sm:$0xff] %v268_v13 }
  0xe8 PF: > { %s13_s12 = sadd.s32 1, %s387_s12  }
  0xe9   : > { %p10_p4 = scmp.ge.s32.totalorder %s13_s12, 4  }
  0xeb   :  { %12 = sbr.rel (!%p10_p4) target bundleno = 1 (0x1), region = 65 }

</bundles_post_ra>
